<compile_context>
chip_gen: v6e
topology: v6e:2x2x1
jax: 0.10.0
libtpu: 0.0.40
codegen_flags: <defaults>
</compile_context>

<pallas_src>
import math
import functools

import jax
import jax.numpy as jnp
from jax.experimental import pallas as pl
from jax.experimental.pallas import tpu as pltpu


_LANE = 128                 # logits out-dim padded to a multiple of the lane width
_DEFAULT_BATCH_TILE = 512   # multiple of 256 (v6e/v7x MXU rows) and 16 (bf16 pack)


def _mlp_kernel(x_ref, wfc_ref, bfc_ref, wcls_ref, bcls_ref,
                feat_ref, logits_ref):
    # Hoist bias loads (single load each; no per-dot re-broadcast).
    b_fc = bfc_ref[...]
    b_cls = bcls_ref[...]

    # fc layer (MXU, f32 accumulation) + bias + ReLU in f32 on the VPU.
    h = jnp.dot(x_ref[...], wfc_ref[...], preferred_element_type=jnp.float32)
    h = jnp.maximum(h + b_fc, 0.0)

    # TODO(synk): dropout(p=0.7) is identity in eval mode; training-mode
    # stochastic masking (pltpu.prng_seed / prng_random_bits, scale 1/(1-p))
    # is not implemented here.
    feat_ref[...] = h.astype(feat_ref.dtype)

    # classifier layer; cast hidden back to the weight dtype so the MXU sees
    # matching (possibly bf16) operands, accumulate in f32.
    logits = jnp.dot(h.astype(wcls_ref.dtype), wcls_ref[...],
                     preferred_element_type=jnp.float32)
    logits_ref[...] = (logits + b_cls).astype(logits_ref.dtype)


def prepare_params(w_fc, b_fc, w_cls, b_cls, *, compute_dtype=None):
    """Pad the classifier out-dim to a lane-dense multiple of 128 and (optionally)
    cast weights to the matmul-operand dtype.  Done ONCE at init so the per-call
    forward is a single pallas_call with no wrapper pad/cast ops.

    w_fc: (F, F); b_fc: (F,) or (1, F); w_cls: (F, C); b_cls: (C,) or (1, C).
    """
    F, C = w_cls.shape
    C_pad = max(_LANE, ((C + _LANE - 1) // _LANE) * _LANE)
    b_fc = jnp.asarray(b_fc).reshape(1, F).astype(jnp.float32)
    b_cls = jnp.asarray(b_cls).reshape(1, C).astype(jnp.float32)
    if C_pad != C:
        w_cls = jnp.zeros((F, C_pad), w_cls.dtype).at[:, :C].set(w_cls)
        b_cls = jnp.zeros((1, C_pad), jnp.float32).at[:, :C].set(b_cls)
    if compute_dtype is not None:
        w_fc = w_fc.astype(compute_dtype)
        w_cls = w_cls.astype(compute_dtype)
    return (w_fc, b_fc, w_cls, b_cls)


def model_forward(inputs, params, *, compute_dtype=None, out_dtype=None,
                  batch_tile=_DEFAULT_BATCH_TILE):
    """inputs: (B, F); params from prepare_params().

    Returns (feat (B, F), logits_padded (B, C_pad)).  The padded classifier
    columns are exact zeros; slice [:, :n_class] at the consumer (it usually
    fuses into the next op) instead of paying an extra launch here.
    """
    w_fc, b_fc, w_cls_p, b_cls_p = params
    B, F = inputs.shape
    C_pad = w_cls_p.shape[1]
    out_dtype = inputs.dtype if out_dtype is None else out_dtype
    odt = jnp.dtype(out_dtype).itemsize

    x_in = inputs if compute_dtype is None else inputs.astype(compute_dtype)

    out_shapes = (
        jax.ShapeDtypeStruct((B, F), out_dtype),      # dropout(relu(fc(x)))
        jax.ShapeDtypeStruct((B, C_pad), out_dtype),  # lane-dense padded logits
    )

    def nbytes(a):
        return a.size * jnp.dtype(a.dtype).itemsize

    weight_bytes = nbytes(w_fc) + nbytes(w_cls_p) + nbytes(b_fc) + nbytes(b_cls_p)
    cost = pl.CostEstimate(
        flops=2 * B * F * (F + C_pad),
        transcendentals=0,
        bytes_accessed=nbytes(x_in) + weight_bytes + B * (F + C_pad) * odt,
    )

    def vmem_budget(resident_bytes):
        # double-buffer everything + 2 MiB headroom; never below the 32 MiB
        # default, never above 100 MiB (v7x physical VMEM is 64 MiB/TC).
        return int(min(100 << 20, max(32 << 20, 2 * resident_bytes + (2 << 20))))

    use_grid = (B >= 2 * batch_tile) and (B % batch_tile == 0)

    if not use_grid:
        # Small batch: single un-pipelined launch, whole-array VMEM residency
        # (the problem is launch/latency-bound; a 1-point grid only adds
        # per-step overhead and double-buffer VMEM).
        act_bytes = nbytes(x_in) + B * (F + C_pad) * odt
        vmem_spec = pl.BlockSpec(memory_space=pltpu.MemorySpace.VMEM)
        feat, logits_p = pl.pallas_call(
            _mlp_kernel,
            out_shape=out_shapes,
            in_specs=[vmem_spec] * 5,
            out_specs=(vmem_spec, vmem_spec),
            compiler_params=pltpu.CompilerParams(
                vmem_limit_bytes=vmem_budget(weight_bytes + act_bytes)),
            cost_estimate=cost,
        )(x_in, w_fc, b_fc, w_cls_p, b_cls_p)
        return feat, logits_p

    # Large batch: 1-D grid over batch rows.  Weights are DMA'd once (constant
    # index_map); activation/output tiles are auto double-buffered by the
    # BlockSpec pipeline; the batch axis is "parallel" so v7x's 2 TensorCores
    # can split it (no effect on v5e/v6e).
    tb = batch_tile
    grid = (B // tb,)
    tile_bytes = (tb * F * jnp.dtype(x_in.dtype).itemsize
                  + tb * F * odt + tb * C_pad * odt)
    feat, logits_p = pl.pallas_call(
        _mlp_kernel,
        out_shape=out_shapes,
        grid=grid,
        in_specs=[
            pl.BlockSpec((tb, F), lambda i: (i, 0)),       # x: blocked over batch
            pl.BlockSpec((F, F), lambda i: (0, 0)),        # w_fc: resident
            pl.BlockSpec((1, F), lambda i: (0, 0)),        # b_fc: resident
            pl.BlockSpec((F, C_pad), lambda i: (0, 0)),    # w_cls: resident
            pl.BlockSpec((1, C_pad), lambda i: (0, 0)),    # b_cls: resident
        ],
        out_specs=(
            pl.BlockSpec((tb, F), lambda i: (i, 0)),
            pl.BlockSpec((tb, C_pad), lambda i: (i, 0)),
        ),
        compiler_params=pltpu.CompilerParams(
            dimension_semantics=("parallel",),
            vmem_limit_bytes=vmem_budget(weight_bytes + tile_bytes)),
        cost_estimate=cost,
    )(x_in, w_fc, b_fc, w_cls_p, b_cls_p)
    return feat, logits_p


def _xavier_uniform(key, fan_in, fan_out, dtype=jnp.float32):
    # Matches torch.nn.init.xavier_uniform_ for a (fan_out, fan_in) weight;
    # sampled directly in (fan_in, fan_out) layout (same distribution).
    bound = math.sqrt(6.0 / (fan_in + fan_out))
    return jax.random.uniform(key, (fan_in, fan_out), dtype,
                              minval=-bound, maxval=bound)


if __name__ == "__main__":
    # Small shapes consistent with the module (n_feature, n_class scaled down).
    batch, n_feature, n_class = 8, 128, 16

    key = jax.random.PRNGKey(0)
    k_x, k_fc, k_cls, k_big = jax.random.split(key, 4)

    x = jax.random.normal(k_x, (batch, n_feature), jnp.float32)
    w_fc = _xavier_uniform(k_fc, n_feature, n_feature)        # (F, F)
    b_fc = jnp.zeros((n_feature,), jnp.float32)                # bias filled with 0
    w_cls = _xavier_uniform(k_cls, n_feature, n_class)         # (F, C)
    b_cls = jnp.zeros((n_class,), jnp.float32)

    # ---- f32 path (gridless small-batch launch) ----
    params_f32 = prepare_params(w_fc, b_fc, w_cls, b_cls)      # padded once
    fwd_f32 = jax.jit(model_forward)
    feat, logits_p = fwd_f32(x, params_f32)
    jax.block_until_ready((feat, logits_p))
    logits = logits_p[:, :n_class]                             # slice at the consumer

    h_ref = jnp.maximum(x @ w_fc + b_fc[None, :], 0.0)
    logits_ref = h_ref @ w_cls + b_cls[None, :]
    assert feat.shape == (batch, n_feature) and logits.shape == (batch, n_class)
    assert jnp.allclose(feat, h_ref, atol=1e-4, rtol=1e-4)
    assert jnp.allclose(logits, logits_ref, atol=1e-4, rtol=1e-4)
    # padded classifier columns are exact zeros
    assert jnp.all(logits_p[:, n_class:] == 0.0)

    # ---- bf16 matmul-operand path (all generations incl. v5e) ----
    params_bf16 = prepare_params(w_fc, b_fc, w_cls, b_cls,
                                 compute_dtype=jnp.bfloat16)
    fwd_bf16 = jax.jit(
        functools.partial(model_forward, compute_dtype=jnp.bfloat16))
    feat16, logits16_p = fwd_bf16(x, params_bf16)
    jax.block_until_ready((feat16, logits16_p))
    assert jnp.allclose(feat16, h_ref, atol=1e-1, rtol=1e-1)
    assert jnp.allclose(logits16_p[:, :n_class], logits_ref, atol=1e-1, rtol=1e-1)

    # ---- large-batch path: 1-D 'parallel' grid over batch, weights resident ----
    big_batch = 1024
    xb = jax.random.normal(k_big, (big_batch, n_feature), jnp.float32)
    featb, logitsb_p = fwd_f32(xb, params_f32)
    jax.block_until_ready((featb, logitsb_p))
    hb_ref = jnp.maximum(xb @ w_fc + b_fc[None, :], 0.0)
    lb_ref = hb_ref @ w_cls + b_cls[None, :]
    assert jnp.allclose(featb, hb_ref, atol=1e-4, rtol=1e-4)
    assert jnp.allclose(logitsb_p[:, :n_class], lb_ref, atol=1e-4, rtol=1e-4)

    print("KERNEL_OK")
</pallas_src>

<mosaic_0001>
module attributes {stable_mosaic.version = 11 : i64} {
  func.func @_mlp_kernel(%arg0: memref<8x128xf32, #tpu.memory_space<vmem>>, %arg1: memref<128x128xf32, #tpu.memory_space<vmem>>, %arg2: memref<1x128xf32, #tpu.memory_space<vmem>>, %arg3: memref<128x128xf32, #tpu.memory_space<vmem>>, %arg4: memref<1x128xf32, #tpu.memory_space<vmem>>, %arg5: memref<8x128xf32, #tpu.memory_space<vmem>>, %arg6: memref<8x128xf32, #tpu.memory_space<vmem>>) attributes {dimension_semantics = [], scalar_prefetch = 0 : i64, scratch_operands = 0 : i64, tpu.core_type = #tpu.core_type<tc>} {
    %c0 = arith.constant 0 : index
    %c0_0 = arith.constant 0 : index
    %0 = vector.load %arg2[%c0, %c0_0] : memref<1x128xf32, #tpu.memory_space<vmem>>, vector<1x128xf32>
    %c0_1 = arith.constant 0 : index
    %c0_2 = arith.constant 0 : index
    %1 = vector.load %arg4[%c0_1, %c0_2] : memref<1x128xf32, #tpu.memory_space<vmem>>, vector<1x128xf32>
    %c0_3 = arith.constant 0 : index
    %c0_4 = arith.constant 0 : index
    %2 = vector.load %arg0[%c0_3, %c0_4] : memref<8x128xf32, #tpu.memory_space<vmem>>, vector<8x128xf32>
    %c0_5 = arith.constant 0 : index
    %c0_6 = arith.constant 0 : index
    %3 = vector.load %arg1[%c0_5, %c0_6] : memref<128x128xf32, #tpu.memory_space<vmem>>, vector<128x128xf32>
    %cst = arith.constant dense<0.000000e+00> : vector<8x128xf32>
    %4 = tpu.matmul %2, %3, %cst {dimension_numbers = #tpu.dot_dimension_numbers<[1], [0], [0], [1], [0, 0, 1, 1], [], []>} : vector<8x128xf32>, vector<128x128xf32>, vector<8x128xf32> -> vector<8x128xf32>
    %5 = vector.broadcast %0 : vector<1x128xf32> to vector<8x128xf32>
    %6 = arith.addf %4, %5 : vector<8x128xf32>
    %cst_7 = arith.constant 0.000000e+00 : f32
    %7 = vector.broadcast %cst_7 : f32 to vector<8x128xf32>
    %8 = arith.maximumf %6, %7 : vector<8x128xf32>
    %c0_8 = arith.constant 0 : index
    %c0_9 = arith.constant 0 : index
    %9 = vector.load %arg5[%c0_8, %c0_9] : memref<8x128xf32, #tpu.memory_space<vmem>>, vector<8x128xf32>
    tpu.vector_store %arg5[%c0_8, %c0_9], %8 {strides = array<i32>} : memref<8x128xf32, #tpu.memory_space<vmem>>, vector<8x128xf32>,
    %c0_10 = arith.constant 0 : index
    %c0_11 = arith.constant 0 : index
    %10 = vector.load %arg3[%c0_10, %c0_11] : memref<128x128xf32, #tpu.memory_space<vmem>>, vector<128x128xf32>
    %cst_12 = arith.constant dense<0.000000e+00> : vector<8x128xf32>
    %11 = tpu.matmul %8, %10, %cst_12 {dimension_numbers = #tpu.dot_dimension_numbers<[1], [0], [0], [1], [0, 0, 1, 1], [], []>} : vector<8x128xf32>, vector<128x128xf32>, vector<8x128xf32> -> vector<8x128xf32>
    %12 = vector.broadcast %1 : vector<1x128xf32> to vector<8x128xf32>
    %13 = arith.addf %11, %12 : vector<8x128xf32>
    %c0_13 = arith.constant 0 : index
    %c0_14 = arith.constant 0 : index
    %14 = vector.load %arg6[%c0_13, %c0_14] : memref<8x128xf32, #tpu.memory_space<vmem>>, vector<8x128xf32>
    tpu.vector_store %arg6[%c0_13, %c0_14], %13 {strides = array<i32>} : memref<8x128xf32, #tpu.memory_space<vmem>>, vector<8x128xf32>,
    return
  }
}

</mosaic_0001>

<bundles_post_ra>
// kernel: model_forward.1
= control target key start
LH: loop header
LB: loop body
LE: loop exit
PB: predicated region body
PF: predicated region fallthrough
CT: control target
= control target key end

     0   :  { %12 = vsyncpa [#allocation3], 0  ;;  %s605_s0 = inlined_call_operand.hbm [shape: f32[8,128], index: 0, kind: input, shape index: {}]   ;;  %s606_s1 = inlined_call_operand.hbm [shape: f32[128,128], index: 1, kind: input, shape index: {}]   ;;  %s607_s2 = inlined_call_operand.vmem [shape: f32[1,128], index: 2, kind: input, shape index: {}]   ;;  %s608_s3 = inlined_call_operand.hbm [shape: f32[128,128], index: 3, kind: input, shape index: {}]   ;;  %s609_s4 = inlined_call_operand.vmem [shape: f32[1,128], index: 4, kind: input, shape index: {}]   ;;  %s610_s5 = inlined_call_operand.hbm [shape: f32[8,128], index: 5, kind: output, shape index: {0}]   ;;  %s611_s6 = inlined_call_operand.hbm [shape: f32[8,128], index: 6, kind: output, shape index: {1}]  }
   0x1   :  { %13 = vsyncpa [#allocation6], 0 }
   0x2   :  { %14 = vsyncpa [#allocation4], 0 }
   0x3   :  { %15 = vsyncpa [#allocation10], 0  ;;  %s506_s21 = smov [#allocation5]  }
   0x4   :  { %s31_s22 = sshll.u32 %s506_s21, 4  ;;  %s32_s22 = int_to_ptr.vmem [resolvable:$true] %s31_s22 }
   0x5   :  { %s406_s23 = scalar_lea.vmem %s32_s22, 2048  ;;  %p411_p1 = scmp.lt.s32.totalorder %s32_s22, %s32_s22 }
   0x6   :  { %p407_p0 = scmp.ne.s32.totalorder %s32_s22, %s406_s23  ;;  %p412_p2 = scmp.lt.s32.totalorder %s406_s23, %s406_s23 }
   0x8   :  { %p413_p3 = por %p412_p2, %p411_p1 }
   0xa   :  { %p414_p4 = pnand %p413_p3, %p407_p0 }
   0xc   :  { %417 = shalt.err (!%p414_p4)
}
   0xd   :  { %s507_s24 = smov 128   ;;  %s508_s25 = smov 8  }
   0xe   :  { %37 = dma.hbm_to_vmem [thread:$0]  %s606_s1, 2048, %s32_s22, [#allocation6], %s507_s24, %s507_s24, %s508_s25  }
   0xf   :  { %s509_s28 = smov [#allocation2]   ;;  %s510_s30 = smov [#allocation7]  }
  0x10   :  { %s22_s29 = sshll.u32 %s509_s28, 4  ;;  %s45_s7 = sshll.u32 %s510_s30, 4  ;;  %s23_s29 = int_to_ptr.vmem [resolvable:$true] %s22_s29  ;;  %s46_s7 = int_to_ptr.vmem [resolvable:$true] %s45_s7 }
  0x11   :  { %s426_s8 = scalar_lea.vmem %s23_s29, 128  ;;  %p431_p6 = scmp.lt.s32.totalorder %s23_s29, %s23_s29 }
  0x12   :  { %p427_p5 = scmp.ne.s32.totalorder %s23_s29, %s426_s8  ;;  %p432_p7 = scmp.lt.s32.totalorder %s426_s8, %s426_s8 }
  0x14   :  { %p433_p8 = por %p432_p7, %p431_p6 }
  0x16   :  { %p434_p9 = pnand %p433_p8, %p427_p5 }
  0x18   :  { %437 = shalt.err (!%p434_p9)
}
  0x19   :  { %25 = dma.hbm_to_vmem [thread:$0]  %s605_s0, 128, %s23_s29, [#allocation3]  }
  0x1a   :  { %s446_s11 = scalar_lea.vmem %s46_s7, 2048  ;;  %p451_p11 = scmp.lt.s32.totalorder %s46_s7, %s46_s7 }
  0x1b   :  { %p447_p10 = scmp.ne.s32.totalorder %s46_s7, %s446_s11  ;;  %p452_p12 = scmp.lt.s32.totalorder %s446_s11, %s446_s11 }
  0x1d   :  { %p453_p13 = por %p452_p12, %p451_p11 }
  0x1f   :  { %p454_p0 = pnand %p453_p13, %p447_p10 }
  0x21   :  { %457 = shalt.err (!%p454_p0)
}
  0x22   :  { %51 = dma.hbm_to_vmem [thread:$0]  %s608_s3, 2048, %s46_s7, [#allocation6], %s507_s24, %s507_s24, %s508_s25  }
  0x23   :  { %498 = dma.done.wait [#allocation3], 128  }
  0x24   :  { %499 = vsyncadd [#allocation3], 4294967168 }
  0x25   :  { %500 = dma.done.wait [#allocation6], 4096  }
  0x26   :  { %501 = vsyncadd [#allocation6], 4294963200  ;;  %v511_v0 = vmov 0.0   ;;  %vm512_vm0 = vmmov 0   ;;  %v81_v1 = vld [vmem:[#allocation5 + $0x78] sm:$0xff]  ;;  %v80_v2 = vld [vmem:[#allocation5 + $0x70] sm:$0xff] }
  0x27   :  { %319 = vmatprep.subr.mxu0 %v511_v0  ;;  %351 = vmatprep.mubr.msk.f32.mxu0 %vm512_vm0, %v511_v0  ;;  %v79_v3 = vld [vmem:[#allocation5 + $0x68] sm:$0xff]  ;;  %v78_v4 = vld [vmem:[#allocation5 + $0x60] sm:$0xff]  ;;  %v175_v5 = vld [vmem:[#allocation7 + $0x78] sm:$0xff]  ;;  %s513_s13 = smov [#allocation8]  }
  0x28   :  { %354 = vmatprep.subr.mxu1 %v511_v0  ;;  %386 = vmatprep.mubr.msk.f32.mxu1 %vm512_vm0, %v511_v0  ;;  %v77_v6 = vld [vmem:[#allocation5 + $0x58] sm:$0xff]  ;;  %v174_v7 = vld [vmem:[#allocation7 + $0x70] sm:$0xff]  ;;  %v173_v8 = vld [vmem:[#allocation7 + $0x68] sm:$0xff]  ;;  %s259_s14 = sshll.u32 %s513_s13, 4  ;;  %s260_s14 = int_to_ptr.vmem [resolvable:$true] %s259_s14 }
  0x29   :  { %320 = vmatpush3.msra.mxu0 %v81_v1  ;;  %355 = vmatpush3.msra.mxu1 %v175_v5  ;;  %v76_v9 = vld [vmem:[#allocation5 + $0x50] sm:$0xff]  ;;  %v172_v10 = vld [vmem:[#allocation7 + $0x60] sm:$0xff]  ;;  %v75_v11 = vld [vmem:[#allocation5 + $0x48] sm:$0xff]  ;;  %s458_s15 = scalar_lea.vmem %s260_s14, 128  ;;  %p463_p2 = scmp.lt.s32.totalorder %s260_s14, %s260_s14 }
  0x2a   :  { %321 = vmatprep.subr.mxu0 %v511_v0  ;;  %356 = vmatprep.subr.mxu1 %v511_v0  ;;  %v171_v12 = vld [vmem:[#allocation7 + $0x58] sm:$0xff]  ;;  %v74_v13 = vld [vmem:[#allocation5 + $0x40] sm:$0xff]  ;;  %v170_v14 = vld [vmem:[#allocation7 + $0x50] sm:$0xff]  ;;  %p459_p1 = scmp.ne.s32.totalorder %s260_s14, %s458_s15  ;;  %p464_p3 = scmp.lt.s32.totalorder %s458_s15, %s458_s15 }
  0x2b   :  { %322 = vmatpush3.msra.mxu0 %v80_v2  ;;  %357 = vmatpush3.msra.mxu1 %v174_v7  ;;  %v73_v15 = vld [vmem:[#allocation5 + $0x38] sm:$0xff]  ;;  %v169_v16 = vld [vmem:[#allocation7 + $0x48] sm:$0xff]  ;;  %v72_v17 = vld [vmem:[#allocation5 + $0x30] sm:$0xff] }
  0x2c   :  { %323 = vmatprep.subr.mxu0 %v511_v0  ;;  %358 = vmatprep.subr.mxu1 %v511_v0  ;;  %v168_v18 = vld [vmem:[#allocation7 + $0x40] sm:$0xff]  ;;  %v71_v19 = vld [vmem:[#allocation5 + $0x28] sm:$0xff]  ;;  %v167_v20 = vld [vmem:[#allocation7 + $0x38] sm:$0xff]  ;;  %p465_p4 = por %p464_p3, %p463_p2 }
  0x2d   :  { %324 = vmatpush3.msra.mxu0 %v79_v3  ;;  %359 = vmatpush3.msra.mxu1 %v173_v8  ;;  %v70_v21 = vld [vmem:[#allocation5 + $0x20] sm:$0xff]  ;;  %v166_v22 = vld [vmem:[#allocation7 + $0x30] sm:$0xff]  ;;  %v69_v23 = vld [vmem:[#allocation5 + $0x18] sm:$0xff] }
  0x2e   :  { %325 = vmatprep.subr.mxu0 %v511_v0  ;;  %360 = vmatprep.subr.mxu1 %v511_v0  ;;  %v165_v24 = vld [vmem:[#allocation7 + $0x28] sm:$0xff]  ;;  %v68_v25 = vld [vmem:[#allocation5 + $0x10] sm:$0xff]  ;;  %v164_v26 = vld [vmem:[#allocation7 + $0x20] sm:$0xff]  ;;  %p466_p5 = pnand %p465_p4, %p459_p1 }
  0x2f   :  { %326 = vmatpush3.msra.mxu0 %v78_v4  ;;  %361 = vmatpush3.msra.mxu1 %v172_v10  ;;  %v67_v27 = vld [vmem:[#allocation5 + $0x8] sm:$0xff]  ;;  %v163_v28 = vld [vmem:[#allocation7 + $0x18] sm:$0xff]  ;;  %v66_v29 = vld [vmem:[#allocation5] sm:$0xff] }
  0x30   :  { %327 = vmatprep.subr.mxu0 %v511_v0  ;;  %362 = vmatprep.subr.mxu1 %v511_v0  ;;  %v65_v30 = vld [vmem:[#allocation2] sm:$0xff]  ;;  %v162_v31 = vld [vmem:[#allocation7 + $0x10] sm:$0xff]  ;;  %v161_v32 = vld [vmem:[#allocation7 + $0x8] sm:$0xff] }
  0x31   :  { %328 = vmatpush3.msra.mxu0 %v77_v6  ;;  %363 = vmatpush3.msra.mxu1 %v171_v12  ;;  %v160_v33 = vld [vmem:[#allocation7] sm:$0xff]  ;;  %v283_v34 = vld [vmem:[%s607_s2] ss:$0 sm:$0xff] }
  0x32   :  { %329 = vmatprep.subr.mxu0 %v511_v0  ;;  %364 = vmatprep.subr.mxu1 %v511_v0 }
  0x33   :  { %330 = vmatpush3.msra.mxu0 %v76_v9  ;;  %365 = vmatpush3.msra.mxu1 %v170_v14 }
  0x34   :  { %331 = vmatprep.subr.mxu0 %v511_v0  ;;  %366 = vmatprep.subr.mxu1 %v511_v0 }
  0x35   :  { %332 = vmatpush3.msra.mxu0 %v75_v11  ;;  %367 = vmatpush3.msra.mxu1 %v169_v16 }
  0x36   :  { %333 = vmatprep.subr.mxu0 %v511_v0  ;;  %368 = vmatprep.subr.mxu1 %v511_v0 }
  0x37   :  { %334 = vmatpush3.msra.mxu0 %v74_v13  ;;  %369 = vmatpush3.msra.mxu1 %v168_v18 }
  0x38   :  { %335 = vmatprep.subr.mxu0 %v511_v0  ;;  %370 = vmatprep.subr.mxu1 %v511_v0 }
  0x39   :  { %336 = vmatpush3.msra.mxu0 %v73_v15  ;;  %371 = vmatpush3.msra.mxu1 %v167_v20 }
  0x3a   :  { %337 = vmatprep.subr.mxu0 %v511_v0  ;;  %372 = vmatprep.subr.mxu1 %v511_v0 }
  0x3b   :  { %338 = vmatpush3.msra.mxu0 %v72_v17  ;;  %373 = vmatpush3.msra.mxu1 %v166_v22 }
  0x3c   :  { %339 = vmatprep.subr.mxu0 %v511_v0  ;;  %374 = vmatprep.subr.mxu1 %v511_v0 }
  0x3d   :  { %340 = vmatpush3.msra.mxu0 %v71_v19  ;;  %375 = vmatpush3.msra.mxu1 %v165_v24 }
  0x3e   :  { %341 = vmatprep.subr.mxu0 %v511_v0  ;;  %376 = vmatprep.subr.mxu1 %v511_v0 }
  0x3f   :  { %342 = vmatpush3.msra.mxu0 %v70_v21  ;;  %377 = vmatpush3.msra.mxu1 %v164_v26 }
  0x40   :  { %343 = vmatprep.subr.mxu0 %v511_v0  ;;  %378 = vmatprep.subr.mxu1 %v511_v0 }
  0x41   :  { %344 = vmatpush3.msra.mxu0 %v69_v23  ;;  %379 = vmatpush3.msra.mxu1 %v163_v28 }
  0x42   :  { %345 = vmatprep.subr.mxu0 %v511_v0  ;;  %380 = vmatprep.subr.mxu1 %v511_v0 }
  0x43   :  { %346 = vmatpush3.msra.mxu0 %v68_v25  ;;  %381 = vmatpush3.msra.mxu1 %v162_v31 }
  0x44   :  { %347 = vmatprep.subr.mxu0 %v511_v0  ;;  %382 = vmatprep.subr.mxu1 %v511_v0 }
  0x45   :  { %348 = vmatpush3.msra.mxu0 %v67_v27  ;;  %383 = vmatpush3.msra.mxu1 %v161_v32 }
  0x46   :  { %349 = vmatprep.subr.mxu0 %v511_v0  ;;  %384 = vmatprep.subr.mxu1 %v511_v0 }
  0x47   :  { %350 = vmatpush3.msra.mxu0 %v66_v29  ;;  %385 = vmatpush3.msra.mxu1 %v160_v33 }
  0x48   :  { %352 = vmatmul.mubr.f32.vlgmr.msra.gmra.mxu0 %v65_v30 }
 0x108   :  { %v154_v35 = vpop.f32.mrf.mxu0 }
 0x109   :  { %v155_v36 = vadd.f32 %v283_v34, %v154_v35 }
 0x10a   :  { %v353_v37 = vpop.f32.mrf.mxu0 }
 0x10b   :  { %v158_v38 = vmax.f32 %v155_v36, 0.0 }
 0x10d   :  { %159 = vst [vmem:[#allocation8] sm:$0xff] %v158_v38  ;;  %387 = vmatmul.mubr.f32.vlgmr.msra.gmra.mxu1 %v158_v38 }
 0x10e   :  { %469 = shalt.err (!%p466_p5)
}
 0x10f   :  { %262 = dma.vmem_to_hbm [thread:$0]  %s260_s14, 128, %s610_s5, [#allocation4]   ;;  %v284_v39 = vld [vmem:[%s609_s4] ss:$0 sm:$0xff] }
 0x110   :  { %s514_s19 = smov [#allocation9]  }
 0x111   :  { %s269_s20 = sshll.u32 %s514_s19, 4  ;;  %s270_s20 = int_to_ptr.vmem [resolvable:$true] %s269_s20 }
 0x112   :  { %s478_s21 = scalar_lea.vmem %s270_s20, 128  ;;  %p483_p7 = scmp.lt.s32.totalorder %s270_s20, %s270_s20 }
 0x113   :  { %p479_p6 = scmp.ne.s32.totalorder %s270_s20, %s478_s21  ;;  %p484_p8 = scmp.lt.s32.totalorder %s478_s21, %s478_s21 }
 0x115   :  { %p485_p9 = por %p484_p8, %p483_p7 }
 0x117   :  { %p486_p10 = pnand %p485_p9, %p479_p6 }
 0x1cd   :  { %v248_v40 = vpop.f32.mrf.mxu1 }
 0x1ce   :  { %v249_v41 = vadd.f32 %v284_v39, %v248_v40 }
 0x1cf   :  { %v388_v42 = vpop.f32.mrf.mxu1 }
 0x1d0   :  { %252 = vst [vmem:[#allocation9] sm:$0xff] %v249_v41 }
 0x1d1   :  { %489 = shalt.err (!%p486_p10)
}
 0x1d2   :  { %272 = dma.vmem_to_hbm [thread:$0]  %s270_s20, 128, %s611_s6, [#allocation10]  }
 0x1d3   :  { %502 = dma.done.wait [#allocation4], 128  }
 0x1d4   :  { %503 = vsyncadd [#allocation4], 4294967168 }
 0x1d5   :  { %504 = dma.done.wait [#allocation10], 128  }
 0x1d6   :  { %505 = vsyncadd [#allocation10], 4294967168 }
 0x1d7   :  { %279 = vsyncpa [#allocation3], 1 }
 0x1d8   :  { %280 = vsyncpa [#allocation6], 1 }
 0x1d9   :  { %281 = vsyncpa [#allocation4], 1 }
 0x1da   :  { %282 = vsyncpa [#allocation10], 1 }

</bundles_post_ra>
